<compile_context>
chip_gen: v7x
topology: tpu7x:2x2x1
jax: 0.10.0
libtpu: 0.0.40
codegen_flags: <defaults>
</compile_context>

<pallas_src>
import jax
import jax.numpy as jnp
from jax import lax
from jax.experimental import pallas as pl
from jax.experimental.pallas import tpu as pltpu


_STAT_ROWS = 8  # cx, cy, sum(xc), sum(yc), sum(xc*yc), sum(xc^2), sum(yc^2), sum|x-y|


def _stats_kernel(x_ref, y_ref, out_ref,
                  cx_ref, cy_ref, sx_ref, sy_ref, sxy_ref, sxx_ref, syy_ref, sab_ref):
    h = pl.program_id(2)
    nh = pl.num_programs(2)

    x = x_ref[0].astype(jnp.float32)   # (TR, C), cast from native dtype in-kernel
    y = y_ref[0].astype(jnp.float32)

    @pl.when(h == 0)
    def _():
        # Per-chunk shift = mean of the chunk's first tile.  Accumulating shifted
        # moments keeps the uncentered correlation formula numerically close to the
        # centered PyTorch reference (no catastrophic cancellation when mean >> std).
        cx_ref[...] = jnp.mean(x, axis=(0, 1), keepdims=True)
        cy_ref[...] = jnp.mean(y, axis=(0, 1), keepdims=True)
        sx_ref[...] = jnp.zeros_like(sx_ref)
        sy_ref[...] = jnp.zeros_like(sy_ref)
        sxy_ref[...] = jnp.zeros_like(sxy_ref)
        sxx_ref[...] = jnp.zeros_like(sxx_ref)
        syy_ref[...] = jnp.zeros_like(syy_ref)
        sab_ref[...] = jnp.zeros_like(sab_ref)

    cx = cx_ref[...]  # (1, 1)
    cy = cy_ref[...]

    xc = x - cx
    yc = y - cy
    d = x - y

    # TODO(synk): on v7x these quadratic/linear reductions could be fused into one
    # small MXU Gram matmul (the MXU is idle here); kept on the VPU for robustness.
    sx_ref[...] += jnp.sum(xc, axis=(0, 1), keepdims=True)
    sy_ref[...] += jnp.sum(yc, axis=(0, 1), keepdims=True)
    sxy_ref[...] += jnp.sum(xc * yc, axis=(0, 1), keepdims=True)
    sxx_ref[...] += jnp.sum(xc * xc, axis=(0, 1), keepdims=True)
    syy_ref[...] += jnp.sum(yc * yc, axis=(0, 1), keepdims=True)
    sab_ref[...] += jnp.sum(jnp.abs(d), axis=(0, 1), keepdims=True)

    @pl.when(h == nh - 1)
    def _():
        # Dump the 8 chunk statistics, one per sublane row, lane-dense output block.
        row = lax.broadcasted_iota(jnp.int32, (_STAT_ROWS, 128), 0)
        stats = jnp.zeros((_STAT_ROWS, 128), jnp.float32)
        vals = (cx_ref[...], cy_ref[...], sx_ref[...], sy_ref[...],
                sxy_ref[...], sxx_ref[...], syy_ref[...], sab_ref[...])
        for r, v in enumerate(vals):
            stats = jnp.where(row == r, v, stats)
        out_ref[...] = stats.reshape(out_ref.shape)


def _sublane_granularity(itemsize):
    if itemsize >= 4:
        return 8
    if itemsize == 2:
        return 16
    return 32


def _sample_view(shape):
    """Per-sample (R, C) view of the trailing dims (metadata-only reshape)."""
    n = 1
    for d in shape[1:]:
        n *= int(d)
    n = max(int(n), 1)
    if n % 128 == 0:
        c = 128
        for cand in range(1024, 127, -128):   # prefer a wide lane-dense last dim
            if n % cand == 0:
                c = cand
                break
        return n // c, c
    if len(shape) >= 2:
        # Fallback for non-128-divisible samples: keep the native last dim.
        c = int(shape[-1])
        return n // c, c
    return 1, 1


def _choose_row_tile(r, c, itemsize, sublane, target_bytes):
    """Largest multiple-of-`sublane` divisor of r whose (tr, c) tile fits the budget."""
    if r * c * itemsize <= target_bytes or r % sublane != 0:
        return r
    divisors = [d for d in range(sublane, r, sublane) if r % d == 0]
    fitting = [d for d in divisors if d * c * itemsize <= target_bytes]
    if fitting:
        return fitting[-1]
    return divisors[0] if divisors else r


def _vmem_capacity_bytes():
    try:
        return int(pltpu.get_tpu_info().vmem_capacity_bytes)
    except Exception:
        return 64 * 1024 * 1024   # conservative (v7x per-TC) fallback


def _tile_budget_bytes(itemsize, vmem_cap):
    # 2 inputs x 2 pipeline buffers (native dtype) + ~4 f32 upcast temporaries must
    # fit in ~70% of VMEM -> solve for the per-input tile element budget, cap at 8 MiB.
    budget_elems = int((0.70 * vmem_cap - (4 << 20)) // (4 * itemsize + 16))
    budget_elems = max(min(budget_elems, (8 << 20) // itemsize), 8 * 128)
    return budget_elems * itemsize


def reconstruct_loss(outputs, targets, *, max_tile_bytes=None):
    """Pallas TPU implementation of ReconstructLoss.forward."""
    assert outputs.shape == targets.shape
    b = int(outputs.shape[0])
    itemsize = jnp.dtype(outputs.dtype).itemsize
    sublane = _sublane_granularity(itemsize)

    r, c = _sample_view(outputs.shape)
    n_per_sample = r * c

    vmem_cap = _vmem_capacity_bytes()
    target_bytes = _tile_budget_bytes(itemsize, vmem_cap)
    if max_tile_bytes is not None:
        target_bytes = min(target_bytes, int(max_tile_bytes))

    tr = _choose_row_tile(r, c, itemsize, sublane, target_bytes)
    n_tiles = r // tr

    # Split the per-sample reduction into 2 parallel chunks when it tiles evenly:
    # keeps both TensorCores busy on v7x even at batch size 1 (harmless on 1-TC chips).
    n_split = 2 if (n_tiles >= 2 and n_tiles % 2 == 0) else 1
    tiles_per_chunk = n_tiles // n_split
    n_per_chunk = n_per_sample // n_split

    # Metadata-only reshape: no pad, no dtype cast -> the kernel DMA is the only HBM pass.
    x = outputs.reshape(b, r, c)
    y = targets.reshape(b, r, c)

    block_elems = tr * c
    vmem_limit = 4 * block_elems * itemsize + 4 * block_elems * 4 + (4 << 20)
    vmem_limit = int(min(max(vmem_limit, 32 << 20), int(0.75 * vmem_cap)))

    in_spec = pl.BlockSpec((1, tr, c),
                           lambda i, s, h: (i, s * tiles_per_chunk + h, 0))

    per_chunk = pl.pallas_call(
        _stats_kernel,
        out_shape=jax.ShapeDtypeStruct((b, n_split, _STAT_ROWS, 128), jnp.float32),
        grid_spec=pltpu.PrefetchScalarGridSpec(
            num_scalar_prefetch=0,
            grid=(b, n_split, tiles_per_chunk),
            in_specs=[in_spec, in_spec],
            out_specs=pl.BlockSpec((1, 1, _STAT_ROWS, 128),
                                   lambda i, s, h: (i, s, 0, 0)),
            scratch_shapes=[pltpu.VMEM((1, 1), jnp.float32) for _ in range(8)],
        ),
        compiler_params=pltpu.CompilerParams(
            dimension_semantics=("parallel", "parallel", "arbitrary"),
            vmem_limit_bytes=vmem_limit,
        ),
    )(x, y)

    # ---- Finalize in the wrapper (tiny XLA math over (B, n_split, 8)). ----
    stats = per_chunk[:, :, :, 0]                       # (B, n_split, 8)
    cx, cy, sx, sy, sxy, sxx, syy, sab = [stats[:, :, i] for i in range(_STAT_ROWS)]

    n_c = jnp.float32(n_per_chunk)
    n = jnp.float32(n_per_sample)

    # Exact shift-aware (Chan-style) merge of per-chunk moments about a common shift.
    gx = jnp.mean(cx, axis=1, keepdims=True)
    gy = jnp.mean(cy, axis=1, keepdims=True)
    dx = cx - gx
    dy = cy - gy
    sx_t = jnp.sum(sx + n_c * dx, axis=1)               # sum(x - gx) per sample
    sy_t = jnp.sum(sy + n_c * dy, axis=1)
    sxx_t = jnp.sum(sxx + 2.0 * dx * sx + n_c * dx * dx, axis=1)
    syy_t = jnp.sum(syy + 2.0 * dy * sy + n_c * dy * dy, axis=1)
    sxy_t = jnp.sum(sxy + dy * sx + dx * sy + n_c * dx * dy, axis=1)
    sab_t = jnp.sum(sab, axis=1)

    var_x = jnp.maximum(sxx_t - sx_t * sx_t / n, 0.0)   # clamp rounding negatives
    var_y = jnp.maximum(syy_t - sy_t * sy_t / n, 0.0)
    cov = sxy_t - sx_t * sy_t / n
    # Truly zero-variance samples still divide by zero, matching the PyTorch reference.
    corr = 1.0 - cov / (jnp.sqrt(var_x) * jnp.sqrt(var_y))
    l1 = sab_t / n                                      # F.l1_loss(..., 'mean')
    return jnp.mean(corr + l1)


def _reference_loss(outputs, targets):
    """Pure-JAX reference matching the PyTorch module semantics."""
    b = outputs.shape[0]
    total = jnp.float32(0.0)
    for i in range(b):
        xv = outputs[i].reshape(-1).astype(jnp.float32)
        yv = targets[i].reshape(-1).astype(jnp.float32)
        vx = xv - jnp.mean(xv)
        vy = yv - jnp.mean(yv)
        corr = 1.0 - jnp.sum(vx * vy) / (
            jnp.sqrt(jnp.sum(vx ** 2)) * jnp.sqrt(jnp.sum(vy ** 2))
        )
        l1 = jnp.mean(jnp.abs(xv - yv))
        total = total + corr + l1
    return total / b


if __name__ == "__main__":
    key = jax.random.PRNGKey(0)
    k1, k2 = jax.random.split(key)

    # Case 1: NCHW image-reconstruction shapes, f32, lane-dense flatten (N % 128 == 0).
    outputs = jax.random.normal(k1, (2, 4, 16, 16), dtype=jnp.float32)
    targets = jax.random.normal(k2, (2, 4, 16, 16), dtype=jnp.float32)
    loss = jax.block_until_ready(reconstruct_loss(outputs, targets))
    ref = _reference_loss(outputs, targets)
    assert jnp.allclose(loss, ref, rtol=1e-3, atol=1e-5), (loss, ref)

    # Case 2: bf16 inputs (native dtype DMA), non-128-divisible sample size
    # (fallback layout) and mean >> std to exercise the shifted-moment path.
    o2 = (jax.random.normal(k1, (3, 3, 40, 56)) * 0.1 + 2.0).astype(jnp.bfloat16)
    t2 = (jax.random.normal(k2, (3, 3, 40, 56)) * 0.1 + 2.0).astype(jnp.bfloat16)
    loss2 = jax.block_until_ready(reconstruct_loss(o2, t2))
    ref2 = _reference_loss(o2, t2)
    assert jnp.allclose(loss2, ref2, rtol=2e-2, atol=1e-3), (loss2, ref2)

    # Case 3: batch=1 with a small forced tile so the multi-tile accumulation and the
    # 2-way parallel chunk split + wrapper-side moment merge are exercised.
    o3 = jax.random.normal(k1, (1, 32, 32, 32), dtype=jnp.float32) * 0.1 + 5.0
    t3 = jax.random.normal(k2, (1, 32, 32, 32), dtype=jnp.float32) * 0.1 + 5.0
    loss3 = jax.block_until_ready(reconstruct_loss(o3, t3, max_tile_bytes=32 * 1024))
    ref3 = _reference_loss(o3, t3)
    assert jnp.allclose(loss3, ref3, rtol=2e-3, atol=1e-4), (loss3, ref3)

    print("KERNEL_OK")
</pallas_src>

<mosaic_0001>
module attributes {stable_mosaic.version = 11 : i64} {
  func.func @_stats_kernel(%arg0: i32, %arg1: i32, %arg2: i32, %arg3: memref<1x1x1024xf32, #tpu.memory_space<vmem>>, %arg4: memref<1x1x1024xf32, #tpu.memory_space<vmem>>, %arg5: memref<1x1x8x128xf32, #tpu.memory_space<vmem>>, %arg6: memref<1x1xf32, #tpu.memory_space<vmem>>, %arg7: memref<1x1xf32, #tpu.memory_space<vmem>>, %arg8: memref<1x1xf32, #tpu.memory_space<vmem>>, %arg9: memref<1x1xf32, #tpu.memory_space<vmem>>, %arg10: memref<1x1xf32, #tpu.memory_space<vmem>>, %arg11: memref<1x1xf32, #tpu.memory_space<vmem>>, %arg12: memref<1x1xf32, #tpu.memory_space<vmem>>, %arg13: memref<1x1xf32, #tpu.memory_space<vmem>>) attributes {dimension_semantics = [#tpu.dimension_semantics<parallel>, #tpu.dimension_semantics<parallel>, #tpu.dimension_semantics<arbitrary>], iteration_bounds = array<i64: 2, 1, 1>, scalar_prefetch = 0 : i64, scratch_operands = 8 : i64, tpu.core_type = #tpu.core_type<tc>, window_params = [{transform_indices = @transform_0, window_bounds = array<i64: 1, 1, 1024>}, {transform_indices = @transform_1, window_bounds = array<i64: 1, 1, 1024>}, {transform_indices = @transform_2, window_bounds = array<i64: 1, 1, 8, 128>}]} {
    %c0 = arith.constant 0 : index
    %c0_0 = arith.constant 0 : index
    %c0_1 = arith.constant 0 : index
    %0 = vector.load %arg3[%c0, %c0_0, %c0_1] : memref<1x1x1024xf32, #tpu.memory_space<vmem>>, vector<1x1x1024xf32>
    %1 = vector.shape_cast %0 : vector<1x1x1024xf32> to vector<1x1024xf32>
    %c0_2 = arith.constant 0 : index
    %c0_3 = arith.constant 0 : index
    %c0_4 = arith.constant 0 : index
    %2 = vector.load %arg4[%c0_2, %c0_3, %c0_4] : memref<1x1x1024xf32, #tpu.memory_space<vmem>>, vector<1x1x1024xf32>
    %3 = vector.shape_cast %2 : vector<1x1x1024xf32> to vector<1x1024xf32>
    %c0_i32 = arith.constant 0 : i32
    %4 = arith.cmpi eq, %arg2, %c0_i32 : i32
    %5 = arith.extui %4 : i1 to i32
    %c0_i32_5 = arith.constant 0 : i32
    %6 = arith.cmpi ne, %5, %c0_i32_5 : i32
    scf.if %6 {
      %69 = vector.shape_cast %1 : vector<1x1024xf32> to vector<1x1x1024xf32>
      %cst_41 = arith.constant dense<0.000000e+00> : vector<1xf32>
      %70 = vector.multi_reduction <add>, %69, %cst_41 [1, 2] : vector<1x1x1024xf32> to vector<1xf32>
      %71 = vector.shape_cast %70 : vector<1xf32> to vector<1x1x1xf32>
      %72 = vector.extract %71[0, 0, 0] : f32 from vector<1x1x1xf32>
      %73 = vector.broadcast %72 : f32 to vector<1x1xf32>
      %cst_42 = arith.constant 1.024000e+03 : f32
      %74 = vector.broadcast %cst_42 : f32 to vector<1x1xf32>
      %75 = arith.divf %73, %74 : vector<1x1xf32>
      %c0_43 = arith.constant 0 : index
      %c0_44 = arith.constant 0 : index
      %76 = vector.load %arg6[%c0_43, %c0_44] : memref<1x1xf32, #tpu.memory_space<vmem>>, vector<1x1xf32>
      tpu.vector_store %arg6[%c0_43, %c0_44], %75 {strides = array<i32>} : memref<1x1xf32, #tpu.memory_space<vmem>>, vector<1x1xf32>,
      %77 = vector.shape_cast %3 : vector<1x1024xf32> to vector<1x1x1024xf32>
      %cst_45 = arith.constant dense<0.000000e+00> : vector<1xf32>
      %78 = vector.multi_reduction <add>, %77, %cst_45 [1, 2] : vector<1x1x1024xf32> to vector<1xf32>
      %79 = vector.shape_cast %78 : vector<1xf32> to vector<1x1x1xf32>
      %80 = vector.extract %79[0, 0, 0] : f32 from vector<1x1x1xf32>
      %81 = vector.broadcast %80 : f32 to vector<1x1xf32>
      %cst_46 = arith.constant 1.024000e+03 : f32
      %82 = vector.broadcast %cst_46 : f32 to vector<1x1xf32>
      %83 = arith.divf %81, %82 : vector<1x1xf32>
      %c0_47 = arith.constant 0 : index
      %c0_48 = arith.constant 0 : index
      %84 = vector.load %arg7[%c0_47, %c0_48] : memref<1x1xf32, #tpu.memory_space<vmem>>, vector<1x1xf32>
      tpu.vector_store %arg7[%c0_47, %c0_48], %83 {strides = array<i32>} : memref<1x1xf32, #tpu.memory_space<vmem>>, vector<1x1xf32>,
      %cst_49 = arith.constant 0.000000e+00 : f32
      %85 = vector.broadcast %cst_49 : f32 to vector<1x1xf32>
      %c0_50 = arith.constant 0 : index
      %c0_51 = arith.constant 0 : index
      %86 = vector.load %arg8[%c0_50, %c0_51] : memref<1x1xf32, #tpu.memory_space<vmem>>, vector<1x1xf32>
      tpu.vector_store %arg8[%c0_50, %c0_51], %85 {strides = array<i32>} : memref<1x1xf32, #tpu.memory_space<vmem>>, vector<1x1xf32>,
      %cst_52 = arith.constant 0.000000e+00 : f32
      %87 = vector.broadcast %cst_52 : f32 to vector<1x1xf32>
      %c0_53 = arith.constant 0 : index
      %c0_54 = arith.constant 0 : index
      %88 = vector.load %arg9[%c0_53, %c0_54] : memref<1x1xf32, #tpu.memory_space<vmem>>, vector<1x1xf32>
      tpu.vector_store %arg9[%c0_53, %c0_54], %87 {strides = array<i32>} : memref<1x1xf32, #tpu.memory_space<vmem>>, vector<1x1xf32>,
      %cst_55 = arith.constant 0.000000e+00 : f32
      %89 = vector.broadcast %cst_55 : f32 to vector<1x1xf32>
      %c0_56 = arith.constant 0 : index
      %c0_57 = arith.constant 0 : index
      %90 = vector.load %arg10[%c0_56, %c0_57] : memref<1x1xf32, #tpu.memory_space<vmem>>, vector<1x1xf32>
      tpu.vector_store %arg10[%c0_56, %c0_57], %89 {strides = array<i32>} : memref<1x1xf32, #tpu.memory_space<vmem>>, vector<1x1xf32>,
      %cst_58 = arith.constant 0.000000e+00 : f32
      %91 = vector.broadcast %cst_58 : f32 to vector<1x1xf32>
      %c0_59 = arith.constant 0 : index
      %c0_60 = arith.constant 0 : index
      %92 = vector.load %arg11[%c0_59, %c0_60] : memref<1x1xf32, #tpu.memory_space<vmem>>, vector<1x1xf32>
      tpu.vector_store %arg11[%c0_59, %c0_60], %91 {strides = array<i32>} : memref<1x1xf32, #tpu.memory_space<vmem>>, vector<1x1xf32>,
      %cst_61 = arith.constant 0.000000e+00 : f32
      %93 = vector.broadcast %cst_61 : f32 to vector<1x1xf32>
      %c0_62 = arith.constant 0 : index
      %c0_63 = arith.constant 0 : index
      %94 = vector.load %arg12[%c0_62, %c0_63] : memref<1x1xf32, #tpu.memory_space<vmem>>, vector<1x1xf32>
      tpu.vector_store %arg12[%c0_62, %c0_63], %93 {strides = array<i32>} : memref<1x1xf32, #tpu.memory_space<vmem>>, vector<1x1xf32>,
      %cst_64 = arith.constant 0.000000e+00 : f32
      %95 = vector.broadcast %cst_64 : f32 to vector<1x1xf32>
      %c0_65 = arith.constant 0 : index
      %c0_66 = arith.constant 0 : index
      %96 = vector.load %arg13[%c0_65, %c0_66] : memref<1x1xf32, #tpu.memory_space<vmem>>, vector<1x1xf32>
      tpu.vector_store %arg13[%c0_65, %c0_66], %95 {strides = array<i32>} : memref<1x1xf32, #tpu.memory_space<vmem>>, vector<1x1xf32>,
    } else {
    }
    %c0_6 = arith.constant 0 : index
    %c0_7 = arith.constant 0 : index
    %7 = vector.load %arg6[%c0_6, %c0_7] : memref<1x1xf32, #tpu.memory_space<vmem>>, vector<1x1xf32>
    %c0_8 = arith.constant 0 : index
    %c0_9 = arith.constant 0 : index
    %8 = vector.load %arg7[%c0_8, %c0_9] : memref<1x1xf32, #tpu.memory_space<vmem>>, vector<1x1xf32>
    %9 = vector.broadcast %7 : vector<1x1xf32> to vector<1x1024xf32>
    %10 = arith.subf %1, %9 : vector<1x1024xf32>
    %11 = vector.broadcast %8 : vector<1x1xf32> to vector<1x1024xf32>
    %12 = arith.subf %3, %11 : vector<1x1024xf32>
    %13 = arith.subf %1, %3 : vector<1x1024xf32>
    %c0_10 = arith.constant 0 : index
    %c0_11 = arith.constant 0 : index
    %14 = vector.load %arg8[%c0_10, %c0_11] : memref<1x1xf32, #tpu.memory_space<vmem>>, vector<1x1xf32>
    %15 = vector.shape_cast %10 : vector<1x1024xf32> to vector<1x1x1024xf32>
    %cst = arith.constant dense<0.000000e+00> : vector<1xf32>
    %16 = vector.multi_reduction <add>, %15, %cst [1, 2] : vector<1x1x1024xf32> to vector<1xf32>
    %17 = vector.shape_cast %16 : vector<1xf32> to vector<1x1x1xf32>
    %18 = vector.extract %17[0, 0, 0] : f32 from vector<1x1x1xf32>
    %19 = vector.broadcast %18 : f32 to vector<1x1xf32>
    %20 = arith.addf %14, %19 : vector<1x1xf32>
    %c0_12 = arith.constant 0 : index
    %c0_13 = arith.constant 0 : index
    %21 = vector.load %arg8[%c0_12, %c0_13] : memref<1x1xf32, #tpu.memory_space<vmem>>, vector<1x1xf32>
    tpu.vector_store %arg8[%c0_12, %c0_13], %20 {strides = array<i32>} : memref<1x1xf32, #tpu.memory_space<vmem>>, vector<1x1xf32>,
    %c0_14 = arith.constant 0 : index
    %c0_15 = arith.constant 0 : index
    %22 = vector.load %arg9[%c0_14, %c0_15] : memref<1x1xf32, #tpu.memory_space<vmem>>, vector<1x1xf32>
    %23 = vector.shape_cast %12 : vector<1x1024xf32> to vector<1x1x1024xf32>
    %cst_16 = arith.constant dense<0.000000e+00> : vector<1xf32>
    %24 = vector.multi_reduction <add>, %23, %cst_16 [1, 2] : vector<1x1x1024xf32> to vector<1xf32>
    %25 = vector.shape_cast %24 : vector<1xf32> to vector<1x1x1xf32>
    %26 = vector.extract %25[0, 0, 0] : f32 from vector<1x1x1xf32>
    %27 = vector.broadcast %26 : f32 to vector<1x1xf32>
    %28 = arith.addf %22, %27 : vector<1x1xf32>
    %c0_17 = arith.constant 0 : index
    %c0_18 = arith.constant 0 : index
    %29 = vector.load %arg9[%c0_17, %c0_18] : memref<1x1xf32, #tpu.memory_space<vmem>>, vector<1x1xf32>
    tpu.vector_store %arg9[%c0_17, %c0_18], %28 {strides = array<i32>} : memref<1x1xf32, #tpu.memory_space<vmem>>, vector<1x1xf32>,
    %c0_19 = arith.constant 0 : index
    %c0_20 = arith.constant 0 : index
    %30 = vector.load %arg10[%c0_19, %c0_20] : memref<1x1xf32, #tpu.memory_space<vmem>>, vector<1x1xf32>
    %31 = arith.mulf %10, %12 : vector<1x1024xf32>
    %32 = vector.shape_cast %31 : vector<1x1024xf32> to vector<1x1x1024xf32>
    %cst_21 = arith.constant dense<0.000000e+00> : vector<1xf32>
    %33 = vector.multi_reduction <add>, %32, %cst_21 [1, 2] : vector<1x1x1024xf32> to vector<1xf32>
    %34 = vector.shape_cast %33 : vector<1xf32> to vector<1x1x1xf32>
    %35 = vector.extract %34[0, 0, 0] : f32 from vector<1x1x1xf32>
    %36 = vector.broadcast %35 : f32 to vector<1x1xf32>
    %37 = arith.addf %30, %36 : vector<1x1xf32>
    %c0_22 = arith.constant 0 : index
    %c0_23 = arith.constant 0 : index
    %38 = vector.load %arg10[%c0_22, %c0_23] : memref<1x1xf32, #tpu.memory_space<vmem>>, vector<1x1xf32>
    tpu.vector_store %arg10[%c0_22, %c0_23], %37 {strides = array<i32>} : memref<1x1xf32, #tpu.memory_space<vmem>>, vector<1x1xf32>,
    %c0_24 = arith.constant 0 : index
    %c0_25 = arith.constant 0 : index
    %39 = vector.load %arg11[%c0_24, %c0_25] : memref<1x1xf32, #tpu.memory_space<vmem>>, vector<1x1xf32>
    %40 = arith.mulf %10, %10 : vector<1x1024xf32>
    %41 = vector.shape_cast %40 : vector<1x1024xf32> to vector<1x1x1024xf32>
    %cst_26 = arith.constant dense<0.000000e+00> : vector<1xf32>
    %42 = vector.multi_reduction <add>, %41, %cst_26 [1, 2] : vector<1x1x1024xf32> to vector<1xf32>
    %43 = vector.shape_cast %42 : vector<1xf32> to vector<1x1x1xf32>
    %44 = vector.extract %43[0, 0, 0] : f32 from vector<1x1x1xf32>
    %45 = vector.broadcast %44 : f32 to vector<1x1xf32>
    %46 = arith.addf %39, %45 : vector<1x1xf32>
    %c0_27 = arith.constant 0 : index
    %c0_28 = arith.constant 0 : index
    %47 = vector.load %arg11[%c0_27, %c0_28] : memref<1x1xf32, #tpu.memory_space<vmem>>, vector<1x1xf32>
    tpu.vector_store %arg11[%c0_27, %c0_28], %46 {strides = array<i32>} : memref<1x1xf32, #tpu.memory_space<vmem>>, vector<1x1xf32>,
    %c0_29 = arith.constant 0 : index
    %c0_30 = arith.constant 0 : index
    %48 = vector.load %arg12[%c0_29, %c0_30] : memref<1x1xf32, #tpu.memory_space<vmem>>, vector<1x1xf32>
    %49 = arith.mulf %12, %12 : vector<1x1024xf32>
    %50 = vector.shape_cast %49 : vector<1x1024xf32> to vector<1x1x1024xf32>
    %cst_31 = arith.constant dense<0.000000e+00> : vector<1xf32>
    %51 = vector.multi_reduction <add>, %50, %cst_31 [1, 2] : vector<1x1x1024xf32> to vector<1xf32>
    %52 = vector.shape_cast %51 : vector<1xf32> to vector<1x1x1xf32>
    %53 = vector.extract %52[0, 0, 0] : f32 from vector<1x1x1xf32>
    %54 = vector.broadcast %53 : f32 to vector<1x1xf32>
    %55 = arith.addf %48, %54 : vector<1x1xf32>
    %c0_32 = arith.constant 0 : index
    %c0_33 = arith.constant 0 : index
    %56 = vector.load %arg12[%c0_32, %c0_33] : memref<1x1xf32, #tpu.memory_space<vmem>>, vector<1x1xf32>
    tpu.vector_store %arg12[%c0_32, %c0_33], %55 {strides = array<i32>} : memref<1x1xf32, #tpu.memory_space<vmem>>, vector<1x1xf32>,
    %c0_34 = arith.constant 0 : index
    %c0_35 = arith.constant 0 : index
    %57 = vector.load %arg13[%c0_34, %c0_35] : memref<1x1xf32, #tpu.memory_space<vmem>>, vector<1x1xf32>
    %58 = math.absf %13 : vector<1x1024xf32>
    %59 = vector.shape_cast %58 : vector<1x1024xf32> to vector<1x1x1024xf32>
    %cst_36 = arith.constant dense<0.000000e+00> : vector<1xf32>
    %60 = vector.multi_reduction <add>, %59, %cst_36 [1, 2] : vector<1x1x1024xf32> to vector<1xf32>
    %61 = vector.shape_cast %60 : vector<1xf32> to vector<1x1x1xf32>
    %62 = vector.extract %61[0, 0, 0] : f32 from vector<1x1x1xf32>
    %63 = vector.broadcast %62 : f32 to vector<1x1xf32>
    %64 = arith.addf %57, %63 : vector<1x1xf32>
    %c0_37 = arith.constant 0 : index
    %c0_38 = arith.constant 0 : index
    %65 = vector.load %arg13[%c0_37, %c0_38] : memref<1x1xf32, #tpu.memory_space<vmem>>, vector<1x1xf32>
    tpu.vector_store %arg13[%c0_37, %c0_38], %64 {strides = array<i32>} : memref<1x1xf32, #tpu.memory_space<vmem>>, vector<1x1xf32>,
    %c0_i32_39 = arith.constant 0 : i32
    %66 = arith.cmpi eq, %arg2, %c0_i32_39 : i32
    %67 = arith.extui %66 : i1 to i32
    %c0_i32_40 = arith.constant 0 : i32
    %68 = arith.cmpi ne, %67, %c0_i32_40 : i32
    scf.if %68 {
      %69 = tpu.iota {dimensions = array<i32: 0>} : vector<8x128xi32>
      %cst_41 = arith.constant 0.000000e+00 : f32
      %70 = vector.broadcast %cst_41 : f32 to vector<8x128xf32>
      %c0_42 = arith.constant 0 : index
      %c0_43 = arith.constant 0 : index
      %71 = vector.load %arg6[%c0_42, %c0_43] : memref<1x1xf32, #tpu.memory_space<vmem>>, vector<1x1xf32>
      %c0_44 = arith.constant 0 : index
      %c0_45 = arith.constant 0 : index
      %72 = vector.load %arg7[%c0_44, %c0_45] : memref<1x1xf32, #tpu.memory_space<vmem>>, vector<1x1xf32>
      %c0_46 = arith.constant 0 : index
      %c0_47 = arith.constant 0 : index
      %73 = vector.load %arg8[%c0_46, %c0_47] : memref<1x1xf32, #tpu.memory_space<vmem>>, vector<1x1xf32>
      %c0_48 = arith.constant 0 : index
      %c0_49 = arith.constant 0 : index
      %74 = vector.load %arg9[%c0_48, %c0_49] : memref<1x1xf32, #tpu.memory_space<vmem>>, vector<1x1xf32>
      %c0_50 = arith.constant 0 : index
      %c0_51 = arith.constant 0 : index
      %75 = vector.load %arg10[%c0_50, %c0_51] : memref<1x1xf32, #tpu.memory_space<vmem>>, vector<1x1xf32>
      %c0_52 = arith.constant 0 : index
      %c0_53 = arith.constant 0 : index
      %76 = vector.load %arg11[%c0_52, %c0_53] : memref<1x1xf32, #tpu.memory_space<vmem>>, vector<1x1xf32>
      %c0_54 = arith.constant 0 : index
      %c0_55 = arith.constant 0 : index
      %77 = vector.load %arg12[%c0_54, %c0_55] : memref<1x1xf32, #tpu.memory_space<vmem>>, vector<1x1xf32>
      %c0_56 = arith.constant 0 : index
      %c0_57 = arith.constant 0 : index
      %78 = vector.load %arg13[%c0_56, %c0_57] : memref<1x1xf32, #tpu.memory_space<vmem>>, vector<1x1xf32>
      %c0_i32_58 = arith.constant 0 : i32
      %79 = vector.broadcast %c0_i32_58 : i32 to vector<8x128xi32>
      %80 = arith.cmpi eq, %69, %79 : vector<8x128xi32>
      %81 = vector.shape_cast %71 : vector<1x1xf32> to vector<1x1xf32>
      %82 = vector.broadcast %81 : vector<1x1xf32> to vector<8x128xf32>
      %83 = arith.select %80, %82, %70 : vector<8x128xi1>, vector<8x128xf32>
      %c1_i32 = arith.constant 1 : i32
      %84 = vector.broadcast %c1_i32 : i32 to vector<8x128xi32>
      %85 = arith.cmpi eq, %69, %84 : vector<8x128xi32>
      %86 = vector.shape_cast %72 : vector<1x1xf32> to vector<1x1xf32>
      %87 = vector.broadcast %86 : vector<1x1xf32> to vector<8x128xf32>
      %88 = arith.select %85, %87, %83 : vector<8x128xi1>, vector<8x128xf32>
      %c2_i32 = arith.constant 2 : i32
      %89 = vector.broadcast %c2_i32 : i32 to vector<8x128xi32>
      %90 = arith.cmpi eq, %69, %89 : vector<8x128xi32>
      %91 = vector.shape_cast %73 : vector<1x1xf32> to vector<1x1xf32>
      %92 = vector.broadcast %91 : vector<1x1xf32> to vector<8x128xf32>
      %93 = arith.select %90, %92, %88 : vector<8x128xi1>, vector<8x128xf32>
      %c3_i32 = arith.constant 3 : i32
      %94 = vector.broadcast %c3_i32 : i32 to vector<8x128xi32>
      %95 = arith.cmpi eq, %69, %94 : vector<8x128xi32>
      %96 = vector.shape_cast %74 : vector<1x1xf32> to vector<1x1xf32>
      %97 = vector.broadcast %96 : vector<1x1xf32> to vector<8x128xf32>
      %98 = arith.select %95, %97, %93 : vector<8x128xi1>, vector<8x128xf32>
      %c4_i32 = arith.constant 4 : i32
      %99 = vector.broadcast %c4_i32 : i32 to vector<8x128xi32>
      %100 = arith.cmpi eq, %69, %99 : vector<8x128xi32>
      %101 = vector.shape_cast %75 : vector<1x1xf32> to vector<1x1xf32>
      %102 = vector.broadcast %101 : vector<1x1xf32> to vector<8x128xf32>
      %103 = arith.select %100, %102, %98 : vector<8x128xi1>, vector<8x128xf32>
      %c5_i32 = arith.constant 5 : i32
      %104 = vector.broadcast %c5_i32 : i32 to vector<8x128xi32>
      %105 = arith.cmpi eq, %69, %104 : vector<8x128xi32>
      %106 = vector.shape_cast %76 : vector<1x1xf32> to vector<1x1xf32>
      %107 = vector.broadcast %106 : vector<1x1xf32> to vector<8x128xf32>
      %108 = arith.select %105, %107, %103 : vector<8x128xi1>, vector<8x128xf32>
      %c6_i32 = arith.constant 6 : i32
      %109 = vector.broadcast %c6_i32 : i32 to vector<8x128xi32>
      %110 = arith.cmpi eq, %69, %109 : vector<8x128xi32>
      %111 = vector.shape_cast %77 : vector<1x1xf32> to vector<1x1xf32>
      %112 = vector.broadcast %111 : vector<1x1xf32> to vector<8x128xf32>
      %113 = arith.select %110, %112, %108 : vector<8x128xi1>, vector<8x128xf32>
      %c7_i32 = arith.constant 7 : i32
      %114 = vector.broadcast %c7_i32 : i32 to vector<8x128xi32>
      %115 = arith.cmpi eq, %69, %114 : vector<8x128xi32>
      %116 = vector.shape_cast %78 : vector<1x1xf32> to vector<1x1xf32>
      %117 = vector.broadcast %116 : vector<1x1xf32> to vector<8x128xf32>
      %118 = arith.select %115, %117, %113 : vector<8x128xi1>, vector<8x128xf32>
      %119 = vector.shape_cast %118 : vector<8x128xf32> to vector<1x1x8x128xf32>
      %c0_59 = arith.constant 0 : index
      %c0_60 = arith.constant 0 : index
      %c0_61 = arith.constant 0 : index
      %c0_62 = arith.constant 0 : index
      %120 = vector.load %arg5[%c0_59, %c0_60, %c0_61, %c0_62] : memref<1x1x8x128xf32, #tpu.memory_space<vmem>>, vector<1x1x8x128xf32>
      tpu.vector_store %arg5[%c0_59, %c0_60, %c0_61, %c0_62], %119 {strides = array<i32>} : memref<1x1x8x128xf32, #tpu.memory_space<vmem>>, vector<1x1x8x128xf32>,
    } else {
    }
    return
  }
  func.func @transform_0(%arg0: i32, %arg1: i32, %arg2: i32) -> (i32, i32, i32) {
    %c1_i32 = arith.constant 1 : i32
    %0 = arith.muli %arg1, %c1_i32 : i32
    %1 = arith.addi %0, %arg2 : i32
    %c0_i32 = arith.constant 0 : i32
    %c0_i32_0 = arith.constant 0 : i32
    return %arg0, %1, %c0_i32 : i32, i32, i32
  }
  func.func @transform_1(%arg0: i32, %arg1: i32, %arg2: i32) -> (i32, i32, i32) {
    %c1_i32 = arith.constant 1 : i32
    %0 = arith.muli %arg1, %c1_i32 : i32
    %1 = arith.addi %0, %arg2 : i32
    %c0_i32 = arith.constant 0 : i32
    %c0_i32_0 = arith.constant 0 : i32
    return %arg0, %1, %c0_i32 : i32, i32, i32
  }
  func.func @transform_2(%arg0: i32, %arg1: i32, %arg2: i32) -> (i32, i32, i32, i32) {
    %c0_i32 = arith.constant 0 : i32
    %c0_i32_0 = arith.constant 0 : i32
    %c0_i32_1 = arith.constant 0 : i32
    return %arg0, %arg1, %c0_i32, %c0_i32_0 : i32, i32, i32, i32
  }
}

</mosaic_0001>

<bundles_post_ra>
// kernel: tpu_custom_call.1
= control target key start
LH: loop header
LB: loop body
LE: loop exit
PB: predicated region body
PF: predicated region fallthrough
CT: control target
= control target key end

     0   :  { %7 = vsyncpa [#allocation11], 0  ;;  %s1831_s0 = inlined_call_operand.hbm [shape: f32[2,1,1024], index: 0, kind: input, shape index: {}]   ;;  %s1832_s1 = inlined_call_operand.hbm [shape: f32[2,1,1024], index: 1, kind: input, shape index: {}]   ;;  %s1833_s2 = inlined_call_operand.hbm [shape: f32[2,1,8,128], index: 2, kind: output, shape index: {}]  }
   0x1   :  { %9 = vsyncpa [#allocation11 + $0x1], 0 }
   0x2   :  { %10 = vsyncpa [#allocation14], 0 }
   0x3   :  { %12 = vsyncpa [#allocation14 + $0x1], 0 }
   0x4   :  { %13 = vsyncpa [#allocation12], 0 }
   0x5   :  { %15 = vsyncpa [#allocation12 + $0x1], 0  ;;  %s1342_s9 = smov 0   ;;  %s1344_s10 = smov 0  }
   0x6   :  { %s1346_s11 = smov 0   ;;  %s1348_s12 = smov 0  }
   0x7   :  { %s1350_s13 = smov 0   ;;  %s1352_s14 = smov 0  }
   0x8 LB: > { %s1059_s15 = sadd.s32 4294967295, %s1320_s14   ;;  %s1060_s16 = sadd.s32 4294967294, %s1320_s14   ;;  %s1320_s14 = sphi %s1352_s14, %s21_s14   ;;  %s1316_s13 = sphi %s1350_s13, %s1853_s13   ;;  %s1312_s12 = sphi %s1348_s12, %s1852_s12   ;;  %s1308_s11 = sphi %s1346_s11, %s1851_s11   ;;  %s1304_s10 = sphi %s1344_s10, %s1850_s10   ;;  %s1300_s9 = sphi %s1342_s9, %s1849_s9  }
   0x9   : > { %s40_s17 = sadd.s32 1, %s1316_s13  ;;  %s51_s18 = sadd.s32 1, %s1308_s11 }
   0xa   : > { %p42_p0 = scmp.ge.s32.totalorder %s40_s17, 2  ;;  %p58_p1 = scmp.ne.s32.totalorder %s1308_s11, %s1304_s10 }
   0xb   : > { %p59_p2 = scmp.eq.s32.totalorder %s1320_s14, 0  ;;  %p64_p3 = scmp.ne.s32.totalorder %s1304_s10, %s1300_s9 }
   0xc   : > { %s1855_s17 = smov (%p42_p0, %s40_s17), 0  ;;  %p65_p5 = scmp.eq.s32.totalorder %s1059_s15, 0 }
   0xd   : > { %p1383_p4 = por %p59_p2, %p58_p1  ;;  %s46_s20 = ssub.s32 %s1316_s13, %s1855_s17 }
   0xe   : > { %p120_p6 = scmp.eq.s32.totalorder %s1059_s15, 1  ;;  %p49_p7 = scmp.eq.s32.totalorder %s46_s20, 0 }
   0xf   : > { %p1389_p8 = por %p65_p5, %p64_p3  ;;  %p126_p10 = scmp.eq.s32.totalorder %s1060_s16, 1 }
  0x10   : > { %p1393_p9 = por %p120_p6, %p58_p1  ;;  %p1120_p13 = scmp.lt.s32.totalorder %s1320_s14, 2 }
  0x11   : > { %s1837_s21 = scalar_select %p1389_p8, 1, 0 }
  0x12   : > { %s1838_s22 = scalar_select %p1393_p9, 1, 0 }
  0x13   : > { %s1398_s23 = scalar_select %p49_p7, %s1308_s11, %s51_s18  }
  0x14   : > { %p1400_p11 = por %p126_p10, %p64_p3  ;;  %s1407_s25 = sand.u32 1, %s1308_s11  }
  0x15   : > { %s1063_s26 = sshll.u32 %s1407_s25, 3  ;;  %s1085_s27 = sshll.u32 %s1316_s13, 7 }
  0x16   : > { %s1839_s24 = scalar_select %p1400_p11, 1, 0 }
  0x17   : > { %s1416_s30 = scalar_lea.hbm %s1831_s0, %s1085_s27  ;;  %s150_s3 = scalar_lea.vmem [#allocation10], %s1063_s26 }
  0x18   : > { %s161_s4 = sshll.u32 %s150_s3, 4  ;;  %p1424_p0 = pnand %p1120_p13, %p1383_p4  ;;  %s1420_s4 = int_to_ptr.vmem [resolvable:$true] %s161_s4 }
  0x19   : > { %s147_s6 = scalar_lea.sflag [#allocation11], %s1407_s25  ;;  %s1174_s7 = scalar_lea.hbm %s1416_s30, 128 }
  0x1a   : > { %p1175_p3 = scmp.ne.s32.totalorder %s1416_s30, %s1174_s7  ;;  %p1176_p5 = pneg %p1424_p0 }
  0x1b   : > { %s1179_s16 = scalar_lea.hbm %s1831_s0, 256  ;;  %p1180_p4 = scmp.lt.u32.totalorder %s1416_s30, %s1831_s0 }
  0x1c   : > { %p1177_p6 = pnand %p1176_p5, %p1175_p3  ;;  %p1181_p10 = scmp.lt.u32.totalorder %s1179_s16, %s1174_s7 }
  0x1d   : > { %p1183_p12 = scmp.lt.u32.totalorder %s1174_s7, %s1416_s30 }
  0x1e   : > { %p1178_p7 = pneg %p1177_p6  ;;  %p1182_p13 = por %p1181_p10, %p1180_p4 }
  0x20   : > { %p1184_p1 = por %p1183_p12, %p1182_p13 }
  0x22   : > { %p1185_p2 = pnand %p1184_p1, %p1178_p7 }
  0x24   : > { %1188 = shalt.err (!%p1185_p2)
}
  0x25   : > { %s1189_s20 = scalar_lea.vmem %s1420_s4, 128  ;;  %s1322_s28 = smov [#allocation10]  }
  0x26   : > { %p1190_p3 = scmp.ne.s32.totalorder %s1420_s4, %s1189_s20  ;;  %s1194_s29 = sshll.u32 %s1322_s28, 4  ;;  %s1195_s29 = int_to_ptr.vmem [resolvable:$false] %s1194_s29 }
  0x27   : > { %s1196_s3 = scalar_lea.vmem %s1195_s29, 256  ;;  %p1197_p9 = scmp.lt.s32.totalorder %s1420_s4, %s1195_s29 }
  0x28   : > { %p1192_p6 = pnand %p1190_p3, %p1176_p5  ;;  %p1198_p4 = scmp.lt.s32.totalorder %s1196_s3, %s1189_s20 }
  0x2a   : > { %p1193_p11 = pneg %p1192_p6  ;;  %p1199_p10 = por %p1198_p4, %p1197_p9 }
  0x2c   : > { %p1200_p12 = pnand %p1199_p10, %p1193_p11 }
  0x2e   : > { %1203 = shalt.err (!%p1200_p12)
}
  0x2f   : > { %1112 = dma.hbm_to_vmem [thread:$0]  (!%p1424_p0), %s1416_s30, 128, %s1420_s4, %s147_s6  }
  0x30   : > { %p1841_p1 = scmp.lt.s32.totalorder %s1320_s14, 3  ;;  %p1842_p2 = scmp.ge.s32.totalorder %s1320_s14, 1 }
  0x31   : > { %s1469_s16 = scalar_lea.hbm %s1832_s1, %s1085_s27  ;;  %s172_s18 = scalar_lea.vmem [#allocation13], %s1063_s26 }
  0x32   : > { %p1460_p7 = pnand %p1842_p2, %p1841_p1  ;;  %s183_s19 = sshll.u32 %s172_s18, 4  ;;  %s184_s19 = int_to_ptr.vmem [resolvable:$true] %s183_s19 }
  0x33   : > { %s169_s30 = scalar_lea.sflag [#allocation14], %s1407_s25  ;;  %s1204_s4 = scalar_lea.hbm %s1469_s16, 128 }
  0x34   : > { %s1843_s7 = scalar_select %p1460_p7, 1, 0 }
  0x35   : > { %p1205_p9 = scmp.ne.s32.totalorder %s1469_s16, %s1204_s4  ;;  %s1209_s27 = scalar_lea.hbm %s1832_s1, 256 }
  0x36   : > { %p1210_p3 = scmp.lt.u32.totalorder %s1469_s16, %s1832_s1  ;;  %p1211_p6 = scmp.lt.u32.totalorder %s1209_s27, %s1204_s4 }
  0x37   : > { %p1207_p11 = pnand %p1205_p9, %p1176_p5  ;;  %p1213_p10 = scmp.lt.u32.totalorder %s1204_s4, %s1469_s16 }
  0x38   : > { %p1212_p4 = por %p1211_p6, %p1210_p3 }
  0x39   : > { %p1208_p13 = pneg %p1207_p11 }
  0x3a   : > { %p1214_p12 = por %p1213_p10, %p1212_p4 }
  0x3c   : > { %p1215_p1 = pnand %p1214_p12, %p1208_p13 }
  0x3e   : > { %1218 = shalt.err (!%p1215_p1)
}
  0x3f   : > { %s1219_s25 = scalar_lea.vmem %s184_s19, 128  ;;  %s1323_s26 = smov [#allocation13]  }
  0x40   : > { %p1220_p2 = scmp.ne.s32.totalorder %s184_s19, %s1219_s25  ;;  %s1224_s3 = sshll.u32 %s1323_s26, 4  ;;  %s1225_s3 = int_to_ptr.vmem [resolvable:$false] %s1224_s3 }
  0x41   : > { %s1226_s8 = scalar_lea.vmem %s1225_s3, 256  ;;  %p1227_p8 = scmp.lt.s32.totalorder %s184_s19, %s1225_s3 }
  0x42   : > { %p1222_p9 = pnand %p1220_p2, %p1176_p5  ;;  %p1228_p7 = scmp.lt.s32.totalorder %s1226_s8, %s1219_s25 }
  0x44   : > { %p1223_p11 = pneg %p1222_p9  ;;  %p1229_p3 = por %p1228_p7, %p1227_p8 }
  0x46   : > { %p1230_p6 = pnand %p1229_p3, %p1223_p11 }
  0x48   : > { %1233 = shalt.err (!%p1230_p6)
}
  0x49   : > { %1115 = dma.hbm_to_vmem [thread:$0]  (!%p1424_p0), %s1469_s16, 128, %s184_s19, %s169_s30  }
  0x4a   : > { %p1844_p13 = scmp.ne.s32.totalorder %s1843_s7, 0 }
  0x4b   : > { %s1496_s15 = sand.u32 (!%p1844_p13), 1, %s1304_s10   ;;  %p1845_p8 = scmp.ne.s32.totalorder (!%p1844_p13), %s1837_s21, 0 }
  0x4c   : > { %192 = sbr.rel (%p1844_p13) target bundleno = 856 (0x358), region = 28  ;;  %s1499_s18 = sshll.u32 (!%p1844_p13), %s1496_s15, 3 }
  0x4d   : > { %s195_s4 = scalar_lea.sflag (!%p1844_p13), [#allocation11], %s1496_s15  ;;  %s198_s6 = scalar_lea.vmem (!%p1844_p13), [#allocation10], %s1499_s18 }
  0x53   : > { %1287 = dma.done.wait (%p1845_p8), %s195_s4, 128  }
  0x54   : > { %1289 = vsyncadd (%p1845_p8), %s195_s4, 4294967168  ;;  %s204_s5 = scalar_lea.sflag [#allocation14], %s1496_s15  ;;  %s207_s7 = scalar_lea.vmem [#allocation13], %s1499_s18 }
  0x55   : > { %1291 = dma.done.wait (%p1845_p8), %s204_s5, 128  }
  0x56   : > { %1293 = vsyncadd (%p1845_p8), %s204_s5, 4294967168  ;;  %v242_v0 = vlaneseq  ;;  %v1530_v7 = vld [vmem:[%s198_s6] sm:$0xff]  ;;  %vm282_vm0 = vcmask 1040384   ;;  %v1546_v14 = vld [vmem:[%s207_s7] sm:$0xff]  ;;  %v1324_v58 = vmov 0   ;;  %vm310_vm1 = vcmask 0  }
  0x57   : > { %1172 = vset.pattern.permute.xlu1 %v1324_v58  ;;  %1173 = vset.pattern.permute.xlu0 %v1324_v58  ;;  %s1082_s25 = sshll.u32 %s1312_s12, 7  ;;  %s232_s26 = scalar_lea.vmem [#allocation15], %s1499_s18 }
  0x58   : > { %v1513_v1 = vshrl.u32 %v242_v0, 7  ;;  %s946_s3 = sshll.u32 %s232_s26, 4  ;;  %s1782_s6 = scalar_lea.hbm %s1833_s2, %s1082_s25  ;;  %s1784_s3 = int_to_ptr.vmem [resolvable:$true] %s946_s3 }
  0x59   : > { %s932_s12 = scalar_lea.sflag [#allocation12], %s1496_s15  ;;  %s1234_s18 = scalar_lea.vmem %s1784_s3, 128 }
  0x5a   : > { %v1516_v2 = vsub.s32 0, %v1513_v1  ;;  %v1519_v3 = vsub.s32 1, %v1513_v1  ;;  %v1522_v4 = vsub.s32 2, %v1513_v1  ;;  %v1525_v5 = vsub.s32 3, %v1513_v1  ;;  %p1235_p0 = scmp.ne.s32.totalorder %s1784_s3, %s1234_s18  ;;  %p1846_p5 = scmp.ne.s32.totalorder %s1838_s22, 0 }
  0x5b   : > { %v1528_v6 = vsub.s32 4, %v1513_v1  ;;  %v1533_v8 = vsub.s32 5, %v1513_v1  ;;  %v1544_v13 = vsub.s32 6, %v1513_v1  ;;  %v1556_v20 = vsub.s32 7, %v1513_v1  ;;  %s1326_s5 = smov [#allocation15]  }
  0x5c   : > { %v245_v9 = vrot.slane %v1530_v7, %v1516_v2  ;;  %v249_v10 = vrot.slane %v1530_v7, %v1519_v3  ;;  %v253_v11 = vrot.slane %v1530_v7, %v1522_v4  ;;  %v257_v12 = vrot.slane %v1530_v7, %v1525_v5  ;;  %p1236_p7 = pnand %p1235_p0, %p1846_p5  ;;  %s1238_s7 = sshll.u32 %s1326_s5, 4  ;;  %s1239_s7 = int_to_ptr.vmem [resolvable:$false] %s1238_s7 }
  0x5d   : > { %v261_v15 = vrot.slane %v1530_v7, %v1528_v6  ;;  %v265_v19 = vrot.slane %v1530_v7, %v1533_v8  ;;  %v316_v23 = vrot.slane %v1546_v14, %v1516_v2  ;;  %v320_v24 = vrot.slane %v1546_v14, %v1519_v3  ;;  %p1241_p10 = scmp.lt.s32.totalorder %s1784_s3, %s1239_s7 }
  0x5e   : > { %v283_v16 = vsel %vm282_vm0, %v245_v9, 0.0  ;;  %v284_v17 = vsel %vm282_vm0, %v249_v10, 0.0  ;;  %v286_v18 = vsel %vm282_vm0, %v253_v11, 0.0  ;;  %v288_v22 = vsel %vm282_vm0, %v257_v12, 0.0  ;;  %p1237_p4 = pneg %p1236_p7 }
  0x5f   : > { %v285_v21 = vadd.f32 %v284_v17, %v283_v16  ;;  %v324_v25 = vrot.slane %v1546_v14, %v1522_v4  ;;  %v269_v26 = vrot.slane %v1530_v7, %v1544_v13  ;;  %v328_v28 = vrot.slane %v1546_v14, %v1525_v5 }
  0x60   : > { %v290_v29 = vsel %vm282_vm0, %v261_v15, 0.0  ;;  %v332_v30 = vrot.slane %v1546_v14, %v1528_v6  ;;  %v353_v31 = vsel %vm282_vm0, %v316_v23, 0.0  ;;  %v354_v32 = vsel %vm282_vm0, %v320_v24, 0.0 }
  0x61   : > { %v287_v27 = vadd.f32 %v286_v18, %v285_v21  ;;  %v355_v34 = vadd.f32 %v354_v32, %v353_v31  ;;  %v356_v35 = vsel %vm282_vm0, %v324_v25, 0.0  ;;  %v273_v36 = vrot.slane %v1530_v7, %v1556_v20 }
  0x62   : > { %v292_v37 = vsel %vm282_vm0, %v265_v19, 0.0  ;;  %v336_v38 = vrot.slane %v1546_v14, %v1533_v8  ;;  %v358_v39 = vsel %vm282_vm0, %v328_v28, 0.0  ;;  %v294_v42 = vsel %vm282_vm0, %v269_v26, 0.0 }
  0x63   : > { %v289_v33 = vadd.f32 %v288_v22, %v287_v27  ;;  %v357_v41 = vadd.f32 %v356_v35, %v355_v34  ;;  %v340_v43 = vrot.slane %v1546_v14, %v1544_v13  ;;  %v360_v44 = vsel %vm282_vm0, %v332_v30, 0.0 }
  0x64   : > { %v296_v47 = vsel %vm282_vm0, %v273_v36, 0.0  ;;  %v344_v48 = vrot.slane %v1546_v14, %v1556_v20  ;;  %v362_v49 = vsel %vm282_vm0, %v336_v38, 0.0  ;;  %v408_v26 = vsub.f32 %v1530_v7, %v1546_v14 }
  0x65   : > { %v291_v40 = vadd.f32 %v290_v29, %v289_v33  ;;  %v359_v46 = vadd.f32 %v358_v39, %v357_v41  ;;  %v364_v52 = vsel %vm282_vm0, %v340_v43, 0.0  ;;  %vm842_vm2 = vcmp.eq.s32.totalorder %v1513_v1, 0 }
  0x66   : > { %v366_v55 = vsel %vm282_vm0, %v344_v48, 0.0  ;;  %v1595_v27 = vand.u32 2147483647, %v408_v26  ;;  %vm853_vm3 = vcmp.eq.s32.totalorder %v1513_v1, 1  ;;  %vm864_vm4 = vcmp.eq.s32.totalorder %v1513_v1, 2 }
  0x67   : > { %v293_v45 = vadd.f32 %v292_v37, %v291_v40  ;;  %v361_v51 = vadd.f32 %v360_v44, %v359_v46  ;;  %vm875_vm5 = vcmp.eq.s32.totalorder %v1513_v1, 3  ;;  %vm886_vm6 = vcmp.eq.s32.totalorder %v1513_v1, 4 }
  0x68   : > { %v765_v28 = vrot.slane %v1595_v27, %v1516_v2  ;;  %v769_v29 = vrot.slane %v1595_v27, %v1519_v3  ;;  %v773_v36 = vrot.slane %v1595_v27, %v1522_v4  ;;  %v777_v41 = vrot.slane %v1595_v27, %v1525_v5 }
  0x69   : > { %v295_v50 = vadd.f32 %v294_v42, %v293_v45  ;;  %v363_v54 = vadd.f32 %v362_v49, %v361_v51  ;;  %v785_v48 = vrot.slane %v1595_v27, %v1533_v8  ;;  %vm897_vm7 = vcmp.eq.s32.totalorder %v1513_v1, 5 }
  0x6a   : > { %v802_v33 = vsel %vm282_vm0, %v765_v28, 0.0  ;;  %v803_v34 = vsel %vm282_vm0, %v769_v29, 0.0  ;;  %v805_v49 = vsel %vm282_vm0, %v773_v36, 0.0  ;;  %vm908_vm8 = vcmp.eq.s32.totalorder %v1513_v1, 6 }
  0x6b   : > { %v297_v53 = vadd.f32 %v296_v47, %v295_v50  ;;  %v365_v56 = vadd.f32 %v364_v52, %v363_v54  ;;  %v804_v42 = vadd.f32 %v803_v34, %v802_v33  ;;  %vm919_vm9 = vcmp.eq.s32.totalorder %v1513_v1, 7 }
  0x6d   : > { %298 = vadd.xlane.f32.xlu0 %v297_v53  ;;  %v367_v57 = vadd.f32 %v366_v55, %v365_v56  ;;  %v1634_v56 = vsel %vm282_vm0, %v777_v41, 0.0 }
  0x71   : > { %368 = vadd.xlane.f32.xlu0 %v367_v57 }
  0xfa   : > { %v299_v59 = vpop.xlane.xlu0 %298 }
  0xfb   : > { %v300_v60 = vrot.slane %v299_v59, 4 }
  0xfd   : > { %v301_v61 = vadd.f32 %v300_v60, %v299_v59  ;;  %v806_v59 = vadd.f32 %v805_v49, %v804_v42 }
  0xfe   : > { %v369_v62 = vpop.xlane.xlu0 %368 }
  0xff   : > { %v302_v63 = vrot.slane %v301_v61, 2  ;;  %v370_v0 = vrot.slane %v369_v62, 4 }
 0x101   : > { %v371_v9 = vadd.f32 %v370_v0, %v369_v62  ;;  %v303_v10 = vadd.f32 %v302_v63, %v301_v61 }
 0x103   : > { %v372_v11 = vrot.slane %v371_v9, 2  ;;  %v304_v12 = vrot.slane %v303_v10, 1 }
 0x105   : > { %v305_v15 = vadd.f32 %v304_v12, %v303_v10  ;;  %v373_v16 = vadd.f32 %v372_v11, %v371_v9 }
 0x107   : > { %1087 = vpush %v305_v15  ;;  %v374_v17 = vrot.slane %v373_v16, 1 }
 0x109   : > { %v375_v18 = vadd.f32 %v374_v17, %v373_v16 }
 0x10b   : > { %1089 = vpush %v375_v18 }
 0x138   : > { %s1088_s21 = spop %1087 }
 0x139   : > { %v307_v19 = vstv %s1088_s21  ;;  %s1240_s21 = scalar_lea.vmem %s1239_s7, 256 }
 0x13a   : > { %v309_v21 = vmul.f32 0.0009765625, %v307_v19  ;;  %p1242_p12 = scmp.lt.s32.totalorder %s1240_s21, %s1234_s18 }
 0x13c   : > { %311 = vst.msk [vmem:[#allocation2] sm:$0x1] %vm310_vm1, %v309_v21  ;;  %s1090_s16 = spop %1089  ;;  %p1243_p1 = por %p1242_p12, %p1241_p10 }
 0x13d   : > { %v377_v22 = vstv %s1090_s16 }
 0x13e   : > { %v378_v23 = vmul.f32 0.0009765625, %v377_v22  ;;  %p1244_p2 = pnand %p1243_p1, %p1237_p4 }
 0x140   : > { %379 = vst.msk [vmem:[#allocation3] sm:$0x1] %vm310_vm1, %v378_v23 }
 0x143   : > { %v386_v24 = vld [vmem:[#allocation2] sm:$0x1] }
 0x144   : > { %390 = vperm.xlu1 %1172, %v386_v24  }
 0x147   : > { %v387_v25 = vld [vmem:[#allocation3] sm:$0x1] }
 0x148   : > { %400 = vperm.xlu1 %1172, %v387_v25  }
 0x1c3   : > { %v391_v30 = vpop.permute.xlu1 %390 }
 0x1c4   : > { %v396_v31 = vrot.slane %v391_v30, %v1516_v2 }
 0x1c6   : > { %v397_v32 = vsub.f32 %v1530_v7, %v396_v31  ;;  %v781_v7 = vrot.slane %v1595_v27, %v1528_v6 }
 0x1c7   : > { %v401_v35 = vpop.permute.xlu1 %400 }
 0x1c8   : > { %v406_v37 = vrot.slane %v401_v35, %v1516_v2  ;;  %v414_v38 = vrot.slane %v397_v32, %v1516_v2  ;;  %v418_v39 = vrot.slane %v397_v32, %v1519_v3  ;;  %v422_v40 = vrot.slane %v397_v32, %v1522_v4 }
 0x1c9   : > { %v426_v44 = vrot.slane %v397_v32, %v1525_v5  ;;  %v430_v50 = vrot.slane %v397_v32, %v1528_v6  ;;  %v434_v51 = vrot.slane %v397_v32, %v1533_v8  ;;  %v438_v57 = vrot.slane %v397_v32, %v1544_v13 }
 0x1ca   : > { %v1616_v43 = vsub.f32 %v1546_v14, %v406_v37  ;;  %v452_v45 = vsel %vm282_vm0, %v414_v38, 0.0  ;;  %v453_v46 = vsel %vm282_vm0, %v418_v39, 0.0  ;;  %v455_v52 = vsel %vm282_vm0, %v422_v40, 0.0 }
 0x1cb   : > { %v454_v47 = vadd.f32 %v453_v46, %v452_v45  ;;  %v457_v58 = vsel %vm282_vm0, %v426_v44, 0.0  ;;  %v1639_v60 = vsel %vm282_vm0, %v781_v7, 0.0  ;;  %v442_v9 = vrot.slane %v397_v32, %v1556_v20 }
 0x1cc   : > { %v485_v14 = vrot.slane %v1616_v43, %v1516_v2  ;;  %v489_v54 = vrot.slane %v1616_v43, %v1519_v3  ;;  %v493_v55 = vrot.slane %v1616_v43, %v1522_v4  ;;  %v497_v62 = vrot.slane %v1616_v43, %v1525_v5 }
 0x1cd   : > { %v456_v53 = vadd.f32 %v455_v52, %v454_v47  ;;  %v459_v10 = vsel %vm282_vm0, %v430_v50, 0.0  ;;  %v461_v11 = vsel %vm282_vm0, %v434_v51, 0.0  ;;  %v501_v16 = vrot.slane %v1616_v43, %v1528_v6 }
 0x1ce   : > { %v522_v63 = vsel %vm282_vm0, %v485_v14, 0.0  ;;  %v523_v0 = vsel %vm282_vm0, %v489_v54, 0.0  ;;  %v525_v17 = vsel %vm282_vm0, %v493_v55, 0.0  ;;  %v1652_v18 = vmul.f32 %v1616_v43, %v397_v32 }
 0x1cf   : > { %v458_v61 = vadd.f32 %v457_v58, %v456_v53  ;;  %v524_v12 = vadd.f32 %v523_v0, %v522_v63  ;;  %v505_v19 = vrot.slane %v1616_v43, %v1533_v8  ;;  %v509_v21 = vrot.slane %v1616_v43, %v1544_v13 }
 0x1d0   : > { %v513_v22 = vrot.slane %v1616_v43, %v1556_v20  ;;  %v527_v25 = vsel %vm282_vm0, %v497_v62, 0.0  ;;  %v555_v26 = vrot.slane %v1652_v18, %v1516_v2  ;;  %v559_v28 = vrot.slane %v1652_v18, %v1519_v3 }
 0x1d1   : > { %v460_v15 = vadd.f32 %v459_v10, %v458_v61  ;;  %v526_v23 = vadd.f32 %v525_v17, %v524_v12  ;;  %v463_v29 = vsel %vm282_vm0, %v438_v57, 0.0  ;;  %v563_v31 = vrot.slane %v1652_v18, %v1522_v4 }
 0x1d2   : > { %v1668_v33 = vmul.f32 %v397_v32, %v397_v32  ;;  %v465_v35 = vsel %vm282_vm0, %v442_v9, 0.0  ;;  %v529_v36 = vsel %vm282_vm0, %v501_v16, 0.0  ;;  %v592_v37 = vsel %vm282_vm0, %v555_v26, 0.0 }
 0x1d3   : > { %v462_v24 = vadd.f32 %v461_v11, %v460_v15  ;;  %v528_v30 = vadd.f32 %v527_v25, %v526_v23  ;;  %v531_v39 = vsel %vm282_vm0, %v505_v19, 0.0  ;;  %v567_v40 = vrot.slane %v1652_v18, %v1525_v5 }
 0x1d4   : > { %v593_v41 = vsel %vm282_vm0, %v559_v28, 0.0  ;;  %v533_v42 = vsel %vm282_vm0, %v509_v21, 0.0  ;;  %v535_v32 = vsel %vm282_vm0, %v513_v22, 0.0  ;;  %v571_v46 = vrot.slane %v1652_v18, %v1528_v6 }
 0x1d5   : > { %v464_v34 = vadd.f32 %v463_v29, %v462_v24  ;;  %v530_v38 = vadd.f32 %v529_v36, %v528_v30  ;;  %v594_v44 = vadd.f32 %v593_v41, %v592_v37  ;;  %v595_v47 = vsel %vm282_vm0, %v563_v31, 0.0 }
 0x1d6   : > { %v625_v49 = vrot.slane %v1668_v33, %v1516_v2  ;;  %v629_v51 = vrot.slane %v1668_v33, %v1519_v3  ;;  %v633_v52 = vrot.slane %v1668_v33, %v1522_v4  ;;  %v1690_v14 = vmul.f32 %v1616_v43, %v1616_v43 }
 0x1d7   : > { %v466_v7 = vadd.f32 %v465_v35, %v464_v34  ;;  %v532_v45 = vadd.f32 %v531_v39, %v530_v38  ;;  %v596_v50 = vadd.f32 %v595_v47, %v594_v44  ;;  %v575_v54 = vrot.slane %v1652_v18, %v1533_v8 }
 0x1d8   : > { %v579_v55 = vrot.slane %v1652_v18, %v1544_v13  ;;  %v597_v57 = vsel %vm282_vm0, %v567_v40, 0.0  ;;  %v637_v61 = vrot.slane %v1668_v33, %v1525_v5  ;;  %v662_v62 = vsel %vm282_vm0, %v625_v49, 0.0 }
 0x1d9   : > { %467 = vadd.xlane.f32.xlu0 %v466_v7  ;;  %v534_v53 = vadd.f32 %v533_v42, %v532_v45  ;;  %v598_v58 = vadd.f32 %v597_v57, %v596_v50  ;;  %v663_v63 = vsel %vm282_vm0, %v629_v51, 0.0  ;;  %v599_v43 = vsel %vm282_vm0, %v571_v46, 0.0 }
 0x1da   : > { %v641_v9 = vrot.slane %v1668_v33, %v1528_v6  ;;  %v664_v10 = vadd.f32 %v663_v63, %v662_v62  ;;  %v583_v11 = vrot.slane %v1652_v18, %v1556_v20  ;;  %v665_v15 = vsel %vm282_vm0, %v633_v52, 0.0  ;;  %v1074_v63 = vld [vmem:[#allocation3] ss:$0 sm:$0xff] }
 0x1db   : > { %v536_v0 = vadd.f32 %v535_v32, %v534_v53  ;;  %v600_v12 = vadd.f32 %v599_v43, %v598_v58  ;;  %v808_v16 = vadd.f32 %v1634_v56, %v806_v59  ;;  %v601_v17 = vsel %vm282_vm0, %v575_v54, 0.0 }
 0x1dc   : > { %v666_v19 = vadd.f32 %v665_v15, %v664_v10  ;;  %v695_v21 = vrot.slane %v1690_v14, %v1516_v2  ;;  %v699_v22 = vrot.slane %v1690_v14, %v1519_v3  ;;  %v645_v24 = vrot.slane %v1668_v33, %v1533_v8 }
 0x1dd   : > { %537 = vadd.xlane.f32.xlu1 %v536_v0  ;;  %v602_v23 = vadd.f32 %v601_v17, %v600_v12  ;;  %v667_v18 = vsel %vm282_vm0, %v637_v61, 0.0  ;;  %v703_v25 = vrot.slane %v1690_v14, %v1522_v4  ;;  %v603_v56 = vsel %vm282_vm0, %v579_v55, 0.0  ;;  %v1073_v0 = vld [vmem:[#allocation2] ss:$0 sm:$0xff] }
 0x1de   : > { %v649_v59 = vrot.slane %v1668_v33, %v1544_v13  ;;  %v668_v26 = vadd.f32 %v667_v18, %v666_v19  ;;  %v669_v2 = vsel %vm282_vm0, %v641_v9, 0.0  ;;  %v707_v3 = vrot.slane %v1690_v14, %v1525_v5 }
 0x1df   : > { %v604_v28 = vadd.f32 %v603_v56, %v602_v23  ;;  %v732_v29 = vsel %vm282_vm0, %v695_v21, 0.0  ;;  %v733_v30 = vsel %vm282_vm0, %v699_v22, 0.0  ;;  %v605_v31 = vsel %vm282_vm0, %v583_v11, 0.0 }
 0x1e0   : > { %v653_v4 = vrot.slane %v1668_v33, %v1556_v20  ;;  %v670_v34 = vadd.f32 %v669_v2, %v668_v26  ;;  %v734_v35 = vadd.f32 %v733_v30, %v732_v29  ;;  %v671_v37 = vsel %vm282_vm0, %v645_v24, 0.0 }
 0x1e1   : > { %v606_v36 = vadd.f32 %v605_v31, %v604_v28  ;;  %v711_v38 = vrot.slane %v1690_v14, %v1528_v6  ;;  %v735_v39 = vsel %vm282_vm0, %v703_v25, 0.0  ;;  %v789_v41 = vrot.slane %v1595_v27, %v1544_v13 }
 0x1e2   : > { %v672_v5 = vadd.f32 %v671_v37, %v670_v34  ;;  %v736_v40 = vadd.f32 %v735_v39, %v734_v35  ;;  %v810_v7 = vadd.f32 %v1639_v60, %v808_v16  ;;  %v673_v33 = vsel %vm282_vm0, %v649_v59, 0.0 }
 0x1e3   : > { %607 = vadd.xlane.f32.xlu0 %v606_v36  ;;  %v715_v42 = vrot.slane %v1690_v14, %v1533_v8  ;;  %v737_v32 = vsel %vm282_vm0, %v707_v3, 0.0  ;;  %v811_v6 = vsel %vm282_vm0, %v785_v48, 0.0  ;;  %v675_v46 = vsel %vm282_vm0, %v653_v4, 0.0 }
 0x1e4   : > { %v674_v44 = vadd.f32 %v673_v33, %v672_v5  ;;  %v738_v45 = vadd.f32 %v737_v32, %v736_v40  ;;  %v719_v60 = vrot.slane %v1690_v14, %v1544_v13  ;;  %v739_v47 = vsel %vm282_vm0, %v711_v38, 0.0 }
 0x1e5   : > { %v812_v51 = vadd.f32 %v811_v6, %v810_v7  ;;  %v723_v52 = vrot.slane %v1690_v14, %v1556_v20  ;;  %v741_v53 = vsel %vm282_vm0, %v715_v42, 0.0  ;;  %v793_v8 = vrot.slane %v1595_v27, %v1556_v20 }
 0x1e6   : > { %v676_v49 = vadd.f32 %v675_v46, %v674_v44  ;;  %v740_v50 = vadd.f32 %v739_v47, %v738_v45  ;;  %v813_v48 = vsel %vm282_vm0, %v789_v41, 0.0  ;;  %v743_v55 = vsel %vm282_vm0, %v719_v60, 0.0 }
 0x1e7   : > { %v814_v57 = vadd.f32 %v813_v48, %v812_v51  ;;  %v745_v58 = vsel %vm282_vm0, %v723_v52, 0.0  ;;  %v815_v61 = vsel %vm282_vm0, %v793_v8, 0.0  ;;  %v1325_v20 = vmov 0.0  }
 0x1e8   : > { %677 = vadd.xlane.f32.xlu0 %v676_v49  ;;  %v742_v54 = vadd.f32 %v741_v53, %v740_v50  ;;  %380 = vst.msk [vmem:[#allocation4] sm:$0x1] %vm310_vm1, %v1325_v20  ;;  %381 = vst.msk [vmem:[#allocation5] sm:$0x1] %vm310_vm1, %v1325_v20 }
 0x1e9   : > { %v816_v14 = vadd.f32 %v815_v61, %v814_v57  ;;  %382 = vst.msk [vmem:[#allocation6] sm:$0x1] %vm310_vm1, %v1325_v20  ;;  %383 = vst.msk [vmem:[#allocation7] sm:$0x1] %vm310_vm1, %v1325_v20 }
 0x1ea   : > { %v744_v13 = vadd.f32 %v743_v55, %v742_v54  ;;  %384 = vst.msk [vmem:[#allocation8] sm:$0x1] %vm310_vm1, %v1325_v20  ;;  %385 = vst.msk [vmem:[#allocation9] sm:$0x1] %vm310_vm1, %v1325_v20 }
 0x1ec   : > { %v746_v62 = vadd.f32 %v745_v58, %v744_v13 }
 0x1ee   : > { %860 = vperm.xlu1 %1172, %v1074_v63   ;;  %747 = vadd.xlane.f32.xlu0 %v746_v62 }
 0x1ef   : > { %v409_v46 = vld [vmem:[#allocation4] sm:$0x1]  ;;  %v480_v49 = vld [vmem:[#allocation5] sm:$0x1] }
 0x1f0   : > { %v549_v52 = vld [vmem:[#allocation6] sm:$0x1]  ;;  %v619_v54 = vld [vmem:[#allocation7] sm:$0x1] }
 0x1f1   : > { %v689_v58 = vld [vmem:[#allocation8] sm:$0x1] }
 0x1f2   : > { %817 = vadd.xlane.f32.xlu0 %v816_v14  ;;  %v759_v14 = vld [vmem:[#allocation9] sm:$0x1] }
 0x208   : > { %849 = vperm.xlu0 %1173, %v1073_v0  }
 0x266   : > { %v468_v27 = vpop.xlane.xlu0 %467 }
 0x267   : > { %v469_v43 = vrot.slane %v468_v27, 4 }
 0x269   : > { %v470_v9 = vadd.f32 %v469_v43, %v468_v27 }
 0x26a   : > { %v538_v11 = vpop.xlane.xlu1 %537 }
 0x26b   : > { %v471_v10 = vrot.slane %v470_v9, 2  ;;  %v539_v12 = vrot.slane %v538_v11, 4 }
 0x26d   : > { %v472_v15 = vadd.f32 %v471_v10, %v470_v9  ;;  %v540_v16 = vadd.f32 %v539_v12, %v538_v11 }
 0x26e   : > { %v861_v10 = vpop.permute.xlu1 %860 }
 0x26f   : > { %v473_v17 = vrot.slane %v472_v15, 1  ;;  %v541_v19 = vrot.slane %v540_v16, 2 }
 0x270   : > { %v608_v22 = vpop.xlane.xlu0 %607 }
 0x271   : > { %v474_v21 = vadd.f32 %v473_v17, %v472_v15  ;;  %v542_v23 = vadd.f32 %v541_v19, %v540_v16  ;;  %v609_v24 = vrot.slane %v608_v22, 4 }
 0x273   : > { %1091 = vpush %v474_v21  ;;  %v543_v18 = vrot.slane %v542_v23, 1  ;;  %v610_v25 = vadd.f32 %v609_v24, %v608_v22 }
 0x275   : > { %v544_v56 = vadd.f32 %v543_v18, %v542_v23  ;;  %v611_v59 = vrot.slane %v610_v25, 2  ;;  %v678_v26 = vpop.xlane.xlu0 %677 }
 0x276   : > { %v679_v2 = vrot.slane %v678_v26, 4 }
 0x277   : > { %1093 = vpush %v544_v56  ;;  %v612_v28 = vadd.f32 %v611_v59, %v610_v25 }
 0x278   : > { %v680_v3 = vadd.f32 %v679_v2, %v678_v26 }
 0x279   : > { %v613_v29 = vrot.slane %v612_v28, 1 }
 0x27a   : > { %v681_v30 = vrot.slane %v680_v3, 2 }
 0x27b   : > { %v748_v31 = vpop.xlane.xlu0 %747  ;;  %v614_v4 = vadd.f32 %v613_v29, %v612_v28 }
 0x27c   : > { %v749_v34 = vrot.slane %v748_v31, 4  ;;  %v682_v35 = vadd.f32 %v681_v30, %v680_v3 }
 0x27d   : > { %1095 = vpush %v614_v4 }
 0x27e   : > { %v750_v36 = vadd.f32 %v749_v34, %v748_v31  ;;  %v683_v37 = vrot.slane %v682_v35, 1 }
 0x27f   : > { %v818_v38 = vpop.xlane.xlu0 %817 }
 0x280   : > { %v751_v39 = vrot.slane %v750_v36, 2  ;;  %v819_v5 = vrot.slane %v818_v38, 4  ;;  %v684_v40 = vadd.f32 %v683_v37, %v682_v35 }
 0x282   : > { %v820_v41 = vadd.f32 %v819_v5, %v818_v38  ;;  %1097 = vpush %v684_v40  ;;  %v752_v7 = vadd.f32 %v751_v39, %v750_v36 }
 0x284   : > { %v821_v33 = vrot.slane %v820_v41, 2  ;;  %v753_v42 = vrot.slane %v752_v7, 1 }
 0x286   : > { %v754_v32 = vadd.f32 %v753_v42, %v752_v7  ;;  %v822_v6 = vadd.f32 %v821_v33, %v820_v41 }
 0x287   : > { %v850_v12 = vpop.permute.xlu0 %849 }
 0x288   : > { %1099 = vpush %v754_v32  ;;  %v823_v44 = vrot.slane %v822_v6, 1  ;;  %v852_v16 = vsel %vm842_vm2, %v850_v12, 0.0 }
 0x289   : > { %v863_v17 = vsel %vm853_vm3, %v861_v10, %v852_v16 }
 0x28a   : > { %v824_v45 = vadd.f32 %v823_v44, %v822_v6 }
 0x28c   : > { %1101 = vpush %v824_v45 }
 0x2a4   : > { %s1092_s19 = spop %1091 }
 0x2a5   : > { %v476_v60 = vstv %s1092_s19 }
 0x2a6   : > { %v477_v47 = vadd.f32 %v476_v60, %v409_v46 }
 0x2a8   : > { %479 = vst.msk [vmem:[#allocation4] sm:$0x1] %vm310_vm1, %v477_v47  ;;  %s1094_s30 = spop %1093 }
 0x2a9   : > { %v546_v50 = vstv %s1094_s30 }
 0x2aa   : > { %v547_v51 = vadd.f32 %v546_v50, %v480_v49 }
 0x2ac   : > { %548 = vst.msk [vmem:[#allocation5] sm:$0x1] %vm310_vm1, %v547_v51 }
 0x2ae   : > { %s1096_s20 = spop %1095 }
 0x2af   : > { %v1075_v53 = vld [vmem:[#allocation4] ss:$0 sm:$0xff]  ;;  %v616_v8 = vstv %s1096_s20 }
 0x2b0   : > { %871 = vperm.xlu1 %1172, %v1075_v53   ;;  %v617_v48 = vadd.f32 %v616_v8, %v549_v52 }
 0x2b2   : > { %618 = vst.msk [vmem:[#allocation6] sm:$0x1] %vm310_vm1, %v617_v48 }
 0x2b3   : > { %v1076_v55 = vld [vmem:[#allocation5] ss:$0 sm:$0xff]  ;;  %s1098_s27 = spop %1097 }
 0x2b4   : > { %882 = vperm.xlu1 %1172, %v1076_v55   ;;  %v686_v13 = vstv %s1098_s27 }
 0x2b5   : > { %v687_v57 = vadd.f32 %v686_v13, %v619_v54 }
 0x2b7   : > { %688 = vst.msk [vmem:[#allocation7] sm:$0x1] %vm310_vm1, %v687_v57 }
 0x2b9   : > { %s1100_s28 = spop %1099  ;;  %v1077_v61 = vld [vmem:[#allocation6] ss:$0 sm:$0xff] }
 0x2ba   : > { %v756_v62 = vstv %s1100_s28  ;;  %893 = vperm.xlu1 %1172, %v1077_v61  }
 0x2bb   : > { %v757_v63 = vadd.f32 %v756_v62, %v689_v58 }
 0x2bd   : > { %758 = vst.msk [vmem:[#allocation8] sm:$0x1] %vm310_vm1, %v757_v63  ;;  %s1102_s29 = spop %1101 }
 0x2be   : > { %v826_v0 = vstv %s1102_s29  ;;  %v1078_v20 = vld [vmem:[#allocation7] ss:$0 sm:$0xff] }
 0x2bf   : > { %v827_v27 = vadd.f32 %v826_v0, %v759_v14  ;;  %904 = vperm.xlu0 %1173, %v1078_v20  }
 0x2c1   : > { %828 = vst.msk [vmem:[#allocation9] sm:$0x1] %vm310_vm1, %v827_v27 }
 0x2c4   : > { %v1079_v43 = vld [vmem:[#allocation8] ss:$0 sm:$0xff] }
 0x2c5   : > { %915 = vperm.xlu1 %1172, %v1079_v43  }
 0x2c8   : > { %v1080_v9 = vld [vmem:[#allocation9] ss:$0 sm:$0xff] }
 0x2c9   : > { %926 = vperm.xlu0 %1173, %v1080_v9  }
 0x32f   : > { %v872_v11 = vpop.permute.xlu1 %871 }
 0x330   : > { %v874_v21 = vsel %vm864_vm4, %v872_v11, %v863_v17 }
 0x333   : > { %v883_v15 = vpop.permute.xlu1 %882 }
 0x334   : > { %v885_v22 = vsel %vm875_vm5, %v883_v15, %v874_v21 }
 0x339   : > { %v894_v19 = vpop.permute.xlu1 %893 }
 0x33a   : > { %v896_v23 = vsel %vm886_vm6, %v894_v19, %v885_v22 }
 0x33e   : > { %v905_v24 = vpop.permute.xlu0 %904 }
 0x33f   : > { %v907_v25 = vsel %vm897_vm7, %v905_v24, %v896_v23 }
 0x344   : > { %v916_v18 = vpop.permute.xlu1 %915 }
 0x345   : > { %v918_v56 = vsel %vm908_vm8, %v916_v18, %v907_v25 }
 0x348   : > { %v927_v59 = vpop.permute.xlu0 %926 }
 0x349   : > { %v929_v26 = vsel %vm919_vm9, %v927_v59, %v918_v56 }
 0x34a   : > { %930 = vst [vmem:[%s232_s26] sm:$0xff] %v929_v26 }
 0x34b   : > { %1247 = shalt.err (!%p1244_p2)
}
 0x34c   : > { %s1248_s15 = scalar_lea.hbm %s1782_s6, 128  ;;  %s1252_s30 = scalar_lea.hbm %s1833_s2, 256 }
 0x34d   : > { %p1249_p9 = scmp.ne.s32.totalorder %s1782_s6, %s1248_s15  ;;  %p1253_p6 = scmp.lt.u32.totalorder %s1782_s6, %s1833_s2 }
 0x34e   : > { %p1254_p13 = scmp.lt.u32.totalorder %s1252_s30, %s1248_s15  ;;  %p1256_p0 = scmp.lt.u32.totalorder %s1248_s15, %s1782_s6 }
 0x34f   : > { %p1250_p11 = pnand %p1249_p9, %p1846_p5 }
 0x350   : > { %p1255_p8 = por %p1254_p13, %p1253_p6 }
 0x351   : > { %p1251_p3 = pneg %p1250_p11 }
 0x352   : > { %p1257_p7 = por %p1256_p0, %p1255_p8 }
 0x354   : > { %p1258_p4 = pnand %p1257_p7, %p1251_p3 }
 0x356   : > { %1261 = shalt.err (!%p1258_p4)
}
 0x357   : > { %1107 = dma.vmem_to_hbm [thread:$0]  (%p1846_p5), %s1784_s3, 128, %s1782_s6, %s932_s12  }
 0x358 PF: > { %s958_s28 = sand.u32 1, %s1300_s9   ;;  %p1847_p10 = scmp.ne.s32.totalorder %s1839_s24, 0 }
 0x359   : > { %p1848_p12 = scmp.ge.s32.totalorder %s1320_s14, 2  ;;  %s959_s29 = scalar_lea.sflag [#allocation12], %s958_s28 }
 0x35b   : > { %p1117_p1 = pnand %p1848_p12, %p1847_p10 }
 0x35d   : > { %1295 = dma.done.wait (!%p1117_p1), %s959_s29, 128  }
 0x35e   : > { %1297 = vsyncadd (!%p1117_p1), %s959_s29, 4294967168  ;;  %s21_s14 = sadd.s32 1, %s1320_s14   ;;  %s1849_s9 = smov %s1304_s10 }
 0x35f   : > { %p18_p2 = scmp.ge.s32.totalorder %s21_s14, 4   ;;  %s1850_s10 = smov %s1308_s11 }
 0x360   : > { %s1851_s11 = smov %s1398_s23  ;;  %s1852_s12 = smov %s1316_s13 }
 0x361   : > { %s1853_s13 = smov %s1855_s17  ;;  %20 = sbr.rel (!%p18_p2) target bundleno = 8 (0x8), region = 94 }
 0x368   :  { %964 = vsyncpa [#allocation11], 1 }
 0x369   :  { %966 = vsyncpa [#allocation11 + $0x1], 1 }
 0x36a   :  { %967 = vsyncpa [#allocation14], 1 }
 0x36b   :  { %969 = vsyncpa [#allocation14 + $0x1], 1 }
 0x36c   :  { %970 = vsyncpa [#allocation12], 1 }
 0x36d   :  { %972 = vsyncpa [#allocation12 + $0x1], 1 }

</bundles_post_ra>
